<compile_context>
chip_gen: v7x
topology: tpu7x:2x2x1
jax: 0.10.0
libtpu: 0.0.40
codegen_flags: <defaults>
</compile_context>

<pallas_src>
import jax
import jax.numpy as jnp
from jax.experimental import pallas as pl
from jax.experimental.pallas import tpu as pltpu


def mlp_kernel(params_ref, x_ref, o_ref):
    """Fused Linear(2,4) -> ReLU -> Linear(4,1) on one dense (TS, C) batch tile.

    params_ref : SMEM f32[17] = [w1 (2x4 row-major), b1 (4), w2 (4), b2 (1)]
    x_ref      : VMEM (2, TS, C) -- feature-major; batch tiled over sublanes
                 (TS) x lanes (C), fully dense.
    o_ref      : VMEM (TS, C)    -- sublane- and lane-dense output tile.
    """
    x0 = x_ref[0].astype(jnp.float32)    # (TS, C) input feature 0
    x1 = x_ref[1].astype(jnp.float32)    # (TS, C) input feature 1

    # Accumulator starts from the fc2 bias (broadcast).
    y = jnp.zeros_like(x0) + params_ref[16]

    # Unrolled VPU FMA chain over the 4 hidden units -- K=2 / K=4 contractions
    # are far too small to be worth MXU fill/drain.
    for j in range(4):
        h = x0 * params_ref[j] + x1 * params_ref[4 + j] + params_ref[8 + j]
        h = jnp.maximum(h, 0.0)          # ReLU
        y = y + h * params_ref[12 + j]

    o_ref[...] = y.astype(o_ref.dtype)


def simple_nn_forward(x, w1, b1, w2, b2, *, x_feature_major=False,
                      lanes=None, rows_per_tile=64):
    """Forward pass of SimpleNN.

    x  : (B, 2)  batch-major (PyTorch layout), or (2, B) if x_feature_major=True
    w1 : (2, 4) = fc1.weight.T    b1 : (4,)
    w2 : (4, 1) = fc2.weight.T    b2 : (1,)
    returns (B, 1) in x.dtype.
    """
    if x_feature_major:
        assert x.shape[0] == 2
        B = x.shape[1]
        xt = x                                   # already (2, B): zero wrapper relayout passes
    else:
        assert x.shape[1] == 2
        B = x.shape[0]
        xt = jnp.transpose(x)                    # (2, B): the single wrapper relayout pass

    out_dtype = x.dtype

    # Pack all 17 parameters into one flat f32 SMEM operand (scalar path; no
    # padded-(8,128) VMEM parameter tiles).
    params = jnp.concatenate(
        [w1.reshape(-1), b1.reshape(-1), w2.reshape(-1), b2.reshape(-1)]
    ).astype(jnp.float32)                        # f32[17]

    # 2-D batch tiling: B -> (R rows x C lanes).  C is a multiple of 128;
    # larger lanes for big batches keep output stores long and unmasked.
    C = lanes if lanes is not None else (512 if B >= 4096 else 128)
    R = pl.cdiv(B, C)
    Bp = R * C
    if Bp != B:
        # Tail pad only; XLA fuses it into the transpose copy above, and it
        # disappears entirely when B is already a multiple of C.
        xt = jnp.pad(xt, ((0, 0), (0, Bp - B)))
    xt = xt.reshape(2, R, C)                     # free reshape (contiguous)

    # Row tile: multiple of 8 sublanes (or the full R).  For large batches this
    # yields >= 2 grid steps so v7x can shard them across its 2 TensorCores.
    TS = min(rows_per_tile, R)
    if TS < R:
        TS = max(8, (TS // 8) * 8)
    grid = (pl.cdiv(R, TS),)

    dsize = jnp.dtype(x.dtype).itemsize
    out = pl.pallas_call(
        mlp_kernel,
        out_shape=jax.ShapeDtypeStruct((R, C), out_dtype),
        grid=grid,
        in_specs=[
            pl.BlockSpec(memory_space=pltpu.MemorySpace.SMEM),    # packed params
            pl.BlockSpec((2, TS, C), lambda i: (0, i, 0)),        # dense x row-block
        ],
        out_specs=pl.BlockSpec((TS, C), lambda i: (i, 0)),        # dense out tile
        compiler_params=pltpu.CompilerParams(
            dimension_semantics=("parallel",),
        ),
        cost_estimate=pl.CostEstimate(
            flops=Bp * (2 * 2 * 4 + 4 + 2 * 4 * 1 + 1),
            transcendentals=0,
            bytes_accessed=dsize * 3 * Bp + 4 * int(params.size),
        ),
    )(params, xt)

    # Undo the batch padding (free when B % C == 0) and restore (B, 1).
    return out.reshape(-1)[:B].reshape(B, 1)


def ref_forward(x, w1, b1, w2, b2):
    # Plain-JAX reference of the PyTorch forward, written without dot ops so
    # XLA's default TPU matmul precision cannot blur the comparison.
    h = jnp.maximum(x[:, 0:1] * w1[0] + x[:, 1:2] * w1[1] + b1, 0.0)   # (B, 4)
    return jnp.sum(h * w2[:, 0], axis=1, keepdims=True) + b2           # (B, 1)


if __name__ == "__main__":
    key = jax.random.PRNGKey(0)
    k_x, k_w1, k_b1, k_w2, k_b2 = jax.random.split(key, 5)

    B = 8  # small batch; input feature dim = 2 per nn.Linear(2, 4)
    x = jax.random.normal(k_x, (B, 2), dtype=jnp.float32)

    # PyTorch Linear stores weight as (out, in); keep them pre-transposed here.
    w1 = jax.random.normal(k_w1, (2, 4), dtype=jnp.float32) * 0.5   # fc1.weight.T
    b1 = jax.random.normal(k_b1, (4,), dtype=jnp.float32) * 0.1     # fc1.bias
    w2 = jax.random.normal(k_w2, (4, 1), dtype=jnp.float32) * 0.5   # fc2.weight.T
    b2 = jax.random.normal(k_b2, (1,), dtype=jnp.float32) * 0.1     # fc2.bias

    ref = ref_forward(x, w1, b1, w2, b2)

    # 1) Default path: natural (B, 2) PyTorch layout.
    out = jax.block_until_ready(simple_nn_forward(x, w1, b1, w2, b2))
    assert out.shape == (B, 1)
    assert jnp.allclose(out, ref, atol=1e-5, rtol=1e-5), "mismatch vs reference"

    # 2) Feature-major path ((2, B) from the producer): zero wrapper relayout passes.
    out_fm = jax.block_until_ready(
        simple_nn_forward(jnp.transpose(x), w1, b1, w2, b2, x_feature_major=True))
    assert jnp.allclose(out_fm, ref, atol=1e-5, rtol=1e-5), "mismatch (feature-major)"

    # 3) Multi-tile path: B divisible by C so there is no padding, grid has 2
    #    "parallel" row-block steps (exercises the pipelined dense tiling).
    B2 = 16384
    x2 = jax.random.normal(jax.random.PRNGKey(1), (B2, 2), dtype=jnp.float32)
    out2 = jax.block_until_ready(
        simple_nn_forward(x2, w1, b1, w2, b2, lanes=128, rows_per_tile=64))
    ref2 = ref_forward(x2, w1, b1, w2, b2)
    assert out2.shape == (B2, 1)
    assert jnp.allclose(out2, ref2, atol=1e-5, rtol=1e-5), "mismatch (multi-tile)"

    print("KERNEL_OK")
</pallas_src>

<mosaic_0001>
module attributes {stable_mosaic.version = 11 : i64} {
  func.func @mlp_kernel(%arg0: i32, %arg1: memref<17xf32, #tpu.memory_space<smem>>, %arg2: memref<2x1x128xf32, #tpu.memory_space<vmem>>, %arg3: memref<1x128xf32, #tpu.memory_space<vmem>>) attributes {dimension_semantics = [#tpu.dimension_semantics<parallel>], iteration_bounds = array<i64: 1>, scalar_prefetch = 0 : i64, scratch_operands = 0 : i64, tpu.core_type = #tpu.core_type<tc>, window_params = [{transform_indices = @transform_0, window_bounds = array<i64: 17>}, {transform_indices = @transform_1, window_bounds = array<i64: 2, 1, 128>}, {transform_indices = @transform_2, window_bounds = array<i64: 1, 128>}]} {
    %c0 = arith.constant 0 : index
    %c0_0 = arith.constant 0 : index
    %c0_1 = arith.constant 0 : index
    %0 = vector.load %arg2[%c0, %c0_0, %c0_1] : memref<2x1x128xf32, #tpu.memory_space<vmem>>, vector<1x1x128xf32>
    %1 = vector.shape_cast %0 : vector<1x1x128xf32> to vector<1x128xf32>
    %c1 = arith.constant 1 : index
    %c0_2 = arith.constant 0 : index
    %c0_3 = arith.constant 0 : index
    %2 = vector.load %arg2[%c1, %c0_2, %c0_3] : memref<2x1x128xf32, #tpu.memory_space<vmem>>, vector<1x1x128xf32>
    %3 = vector.shape_cast %2 : vector<1x1x128xf32> to vector<1x128xf32>
    %cst = arith.constant 0.000000e+00 : f32
    %4 = vector.broadcast %cst : f32 to vector<1x128xf32>
    %c16 = arith.constant 16 : index
    %5 = memref.load %arg1[%c16] : memref<17xf32, #tpu.memory_space<smem>>
    %6 = vector.broadcast %5 : f32 to vector<1x128xf32>
    %7 = arith.addf %4, %6 : vector<1x128xf32>
    %c0_4 = arith.constant 0 : index
    %8 = memref.load %arg1[%c0_4] : memref<17xf32, #tpu.memory_space<smem>>
    %9 = vector.broadcast %8 : f32 to vector<1x128xf32>
    %10 = arith.mulf %1, %9 : vector<1x128xf32>
    %c4 = arith.constant 4 : index
    %11 = memref.load %arg1[%c4] : memref<17xf32, #tpu.memory_space<smem>>
    %12 = vector.broadcast %11 : f32 to vector<1x128xf32>
    %13 = arith.mulf %3, %12 : vector<1x128xf32>
    %14 = arith.addf %10, %13 : vector<1x128xf32>
    %c8 = arith.constant 8 : index
    %15 = memref.load %arg1[%c8] : memref<17xf32, #tpu.memory_space<smem>>
    %16 = vector.broadcast %15 : f32 to vector<1x128xf32>
    %17 = arith.addf %14, %16 : vector<1x128xf32>
    %cst_5 = arith.constant 0.000000e+00 : f32
    %18 = vector.broadcast %cst_5 : f32 to vector<1x128xf32>
    %19 = arith.maximumf %17, %18 : vector<1x128xf32>
    %c12 = arith.constant 12 : index
    %20 = memref.load %arg1[%c12] : memref<17xf32, #tpu.memory_space<smem>>
    %21 = vector.broadcast %20 : f32 to vector<1x128xf32>
    %22 = arith.mulf %19, %21 : vector<1x128xf32>
    %23 = arith.addf %7, %22 : vector<1x128xf32>
    %c1_6 = arith.constant 1 : index
    %24 = memref.load %arg1[%c1_6] : memref<17xf32, #tpu.memory_space<smem>>
    %25 = vector.broadcast %24 : f32 to vector<1x128xf32>
    %26 = arith.mulf %1, %25 : vector<1x128xf32>
    %c5 = arith.constant 5 : index
    %27 = memref.load %arg1[%c5] : memref<17xf32, #tpu.memory_space<smem>>
    %28 = vector.broadcast %27 : f32 to vector<1x128xf32>
    %29 = arith.mulf %3, %28 : vector<1x128xf32>
    %30 = arith.addf %26, %29 : vector<1x128xf32>
    %c9 = arith.constant 9 : index
    %31 = memref.load %arg1[%c9] : memref<17xf32, #tpu.memory_space<smem>>
    %32 = vector.broadcast %31 : f32 to vector<1x128xf32>
    %33 = arith.addf %30, %32 : vector<1x128xf32>
    %cst_7 = arith.constant 0.000000e+00 : f32
    %34 = vector.broadcast %cst_7 : f32 to vector<1x128xf32>
    %35 = arith.maximumf %33, %34 : vector<1x128xf32>
    %c13 = arith.constant 13 : index
    %36 = memref.load %arg1[%c13] : memref<17xf32, #tpu.memory_space<smem>>
    %37 = vector.broadcast %36 : f32 to vector<1x128xf32>
    %38 = arith.mulf %35, %37 : vector<1x128xf32>
    %39 = arith.addf %23, %38 : vector<1x128xf32>
    %c2 = arith.constant 2 : index
    %40 = memref.load %arg1[%c2] : memref<17xf32, #tpu.memory_space<smem>>
    %41 = vector.broadcast %40 : f32 to vector<1x128xf32>
    %42 = arith.mulf %1, %41 : vector<1x128xf32>
    %c6 = arith.constant 6 : index
    %43 = memref.load %arg1[%c6] : memref<17xf32, #tpu.memory_space<smem>>
    %44 = vector.broadcast %43 : f32 to vector<1x128xf32>
    %45 = arith.mulf %3, %44 : vector<1x128xf32>
    %46 = arith.addf %42, %45 : vector<1x128xf32>
    %c10 = arith.constant 10 : index
    %47 = memref.load %arg1[%c10] : memref<17xf32, #tpu.memory_space<smem>>
    %48 = vector.broadcast %47 : f32 to vector<1x128xf32>
    %49 = arith.addf %46, %48 : vector<1x128xf32>
    %cst_8 = arith.constant 0.000000e+00 : f32
    %50 = vector.broadcast %cst_8 : f32 to vector<1x128xf32>
    %51 = arith.maximumf %49, %50 : vector<1x128xf32>
    %c14 = arith.constant 14 : index
    %52 = memref.load %arg1[%c14] : memref<17xf32, #tpu.memory_space<smem>>
    %53 = vector.broadcast %52 : f32 to vector<1x128xf32>
    %54 = arith.mulf %51, %53 : vector<1x128xf32>
    %55 = arith.addf %39, %54 : vector<1x128xf32>
    %c3 = arith.constant 3 : index
    %56 = memref.load %arg1[%c3] : memref<17xf32, #tpu.memory_space<smem>>
    %57 = vector.broadcast %56 : f32 to vector<1x128xf32>
    %58 = arith.mulf %1, %57 : vector<1x128xf32>
    %c7 = arith.constant 7 : index
    %59 = memref.load %arg1[%c7] : memref<17xf32, #tpu.memory_space<smem>>
    %60 = vector.broadcast %59 : f32 to vector<1x128xf32>
    %61 = arith.mulf %3, %60 : vector<1x128xf32>
    %62 = arith.addf %58, %61 : vector<1x128xf32>
    %c11 = arith.constant 11 : index
    %63 = memref.load %arg1[%c11] : memref<17xf32, #tpu.memory_space<smem>>
    %64 = vector.broadcast %63 : f32 to vector<1x128xf32>
    %65 = arith.addf %62, %64 : vector<1x128xf32>
    %cst_9 = arith.constant 0.000000e+00 : f32
    %66 = vector.broadcast %cst_9 : f32 to vector<1x128xf32>
    %67 = arith.maximumf %65, %66 : vector<1x128xf32>
    %c15 = arith.constant 15 : index
    %68 = memref.load %arg1[%c15] : memref<17xf32, #tpu.memory_space<smem>>
    %69 = vector.broadcast %68 : f32 to vector<1x128xf32>
    %70 = arith.mulf %67, %69 : vector<1x128xf32>
    %71 = arith.addf %55, %70 : vector<1x128xf32>
    %c0_10 = arith.constant 0 : index
    %c0_11 = arith.constant 0 : index
    %72 = vector.load %arg3[%c0_10, %c0_11] : memref<1x128xf32, #tpu.memory_space<vmem>>, vector<1x128xf32>
    tpu.vector_store %arg3[%c0_10, %c0_11], %71 {strides = array<i32>} : memref<1x128xf32, #tpu.memory_space<vmem>>, vector<1x128xf32>,
    return
  }
  func.func @transform_0(%arg0: i32) -> i32 {
    %c0_i32 = arith.constant 0 : i32
    %c0_i32_0 = arith.constant 0 : i32
    return %c0_i32 : i32
  }
  func.func @transform_1(%arg0: i32) -> (i32, i32, i32) {
    %c0_i32 = arith.constant 0 : i32
    %c0_i32_0 = arith.constant 0 : i32
    %c0_i32_1 = arith.constant 0 : i32
    return %c0_i32, %arg0, %c0_i32_0 : i32, i32, i32
  }
  func.func @transform_2(%arg0: i32) -> (i32, i32) {
    %c0_i32 = arith.constant 0 : i32
    %c0_i32_0 = arith.constant 0 : i32
    return %arg0, %c0_i32 : i32, i32
  }
}

</mosaic_0001>

<bundles_post_ra>
// kernel: tpu_custom_call.1
= control target key start
LH: loop header
LB: loop body
LE: loop exit
PB: predicated region body
PF: predicated region fallthrough
CT: control target
= control target key end

     0   :  { %7 = vsyncpa [#allocation4], 0  ;;  %s228_s0 = inlined_call_operand.hbm [shape: f32[17], index: 0, kind: input, shape index: {}]   ;;  %s229_s1 = inlined_call_operand.vmem [shape: f32[2,1,128], index: 1, kind: input, shape index: {}]   ;;  %s230_s2 = inlined_call_operand.hbm [shape: f32[1,128], index: 2, kind: output, shape index: {}]  }
   0x1   :  { %8 = vsyncpa [#allocation3], 0  ;;  %s124_s11 = scalar_lea.hbm %s228_s0, 16 }
   0x2   :  { %p125_p0 = scmp.ne.s32.totalorder %s228_s0, %s124_s11  ;;  %p128_p1 = scmp.lt.u32.totalorder %s124_s11, %s228_s0 }
   0x4   :  { %p130_p2 = pnand %p128_p1, %p125_p0 }
   0x6   :  { %133 = shalt.err (!%p130_p2)
}
   0x7   :  { %s160_s16 = smov [#allocation2]  }
   0x8   :  { %16 = dma.hbm_to_smem %s228_s0, 16, %s160_s16, [#allocation4]  }
   0x9   :  { %156 = dma.done.wait [#allocation4], 16  }
   0xa   :  { %157 = vsyncadd [#allocation4], 4294967280 }
   0xb   :  { %22 = sfence }
   0xc   :  { %s29_s19 = sld [smem:[#allocation2]]  ;;  %s107_s20 = sld [smem:[#allocation2 + $0x4]]  ;;  %v23_v0 = vld [vmem:[%s229_s1] sm:$0x1]  ;;  %v105_v1 = vld [vmem:[%s229_s1 + $0x1] sm:$0x1] }
   0xd   :  { %s189_s21 = sld [smem:[#allocation2 + $0x10]]  ;;  %s110_s23 = sld [smem:[#allocation2 + $0x1]] }
   0xe   :  { %s108_s22 = sld [smem:[#allocation2 + $0x8]]  ;;  %s111_s24 = sld [smem:[#allocation2 + $0x5]] }
   0xf   :  { %s194_s27 = sld [smem:[#allocation2 + $0xc]]  ;;  %s196_s28 = sld [smem:[#allocation2 + $0x9]] }
  0x10   :  { %s114_s30 = sld [smem:[#allocation2 + $0x2]]  ;;  %s115_s3 = sld [smem:[#allocation2 + $0x6]] }
  0x11   :  { %s201_s4 = sld [smem:[#allocation2 + $0xd]]  ;;  %s203_s5 = sld [smem:[#allocation2 + $0xa]] }
  0x12   :  { %v30_v2 = vstv %s29_s19  ;;  %v33_v3 = vstv %s107_s20  ;;  %s118_s6 = sld [smem:[#allocation2 + $0x3]]  ;;  %s119_s7 = sld [smem:[#allocation2 + $0x7]] }
  0x13   :  { %v31_v4 = vmul.f32 %v30_v2, %v23_v0  ;;  %v34_v5 = vmul.f32 %v105_v1, %v33_v3  ;;  %s205_s8 = sld [smem:[#allocation2 + $0xb]]  ;;  %v45_v7 = vstv %s110_s23  ;;  %s207_s1 = sld [smem:[#allocation2 + $0xe]]  ;;  %v27_v27 = vstv %s189_s21 }
  0x14   :  { %v37_v6 = vstv %s108_s22  ;;  %v48_v8 = vstv %s111_s24  ;;  %v46_v10 = vmul.f32 %v45_v7, %v23_v0  ;;  %s121_s9 = sld [smem:[#allocation2 + $0xf]]  ;;  %s161_s10 = smov [#allocation5]  }
  0x15   :  { %v35_v9 = vadd.f32 %v34_v5, %v31_v4  ;;  %v49_v11 = vmul.f32 %v105_v1, %v48_v8  ;;  %v52_v12 = vstv %s196_s28  ;;  %v41_v19 = vstv %s194_s27  ;;  %s96_s11 = sshll.u32 %s161_s10, 4  ;;  %s97_s11 = int_to_ptr.vmem [resolvable:$true] %s96_s11 }
  0x16   :  { %v60_v13 = vstv %s114_s30  ;;  %v63_v14 = vstv %s115_s3  ;;  %s134_s12 = scalar_lea.vmem %s97_s11, 16  ;;  %s138_s13 = scalar_lea.vmem %s97_s11, 32 }
  0x17   :  { %v38_v15 = vadd.f32 %v37_v6, %v35_v9  ;;  %v50_v16 = vadd.f32 %v49_v11, %v46_v10  ;;  %v61_v17 = vmul.f32 %v60_v13, %v23_v0  ;;  %v64_v18 = vmul.f32 %v105_v1, %v63_v14  ;;  %p135_p3 = scmp.ne.s32.totalorder %s97_s11, %s134_s12  ;;  %p139_p4 = scmp.lt.s32.totalorder %s97_s11, %s97_s11 }
  0x18   :  { %v67_v20 = vstv %s203_s5  ;;  %v75_v21 = vstv %s118_s6  ;;  %v78_v22 = vstv %s119_s7  ;;  %v56_v28 = vstv %s201_s4  ;;  %p140_p5 = scmp.lt.s32.totalorder %s138_s13, %s134_s12 }
  0x19   :  { %v39_v23 = vmax.f32 %v38_v15, 0.0  ;;  %v53_v24 = vadd.f32 %v52_v12, %v50_v16  ;;  %v65_v25 = vadd.f32 %v64_v18, %v61_v17  ;;  %v76_v26 = vmul.f32 %v75_v21, %v23_v0 }
  0x1a   :  { %v79_v29 = vmul.f32 %v105_v1, %v78_v22  ;;  %v82_v33 = vstv %s205_s8  ;;  %v71_v34 = vstv %s207_s1  ;;  %v86_v42 = vstv %s121_s9  ;;  %p141_p6 = por %p140_p5, %p139_p4 }
  0x1b   :  { %v42_v30 = vmul.f32 %v41_v19, %v39_v23  ;;  %v54_v31 = vmax.f32 %v53_v24, 0.0  ;;  %v68_v32 = vadd.f32 %v67_v20, %v65_v25 }
  0x1c   :  { %v80_v35 = vadd.f32 %v79_v29, %v76_v26  ;;  %p142_p7 = pnand %p141_p6, %p135_p3 }
  0x1d   :  { %v43_v36 = vadd.f32 %v42_v30, %v27_v27  ;;  %v57_v37 = vmul.f32 %v56_v28, %v54_v31  ;;  %v69_v38 = vmax.f32 %v68_v32, 0.0 }
  0x1e   :  { %v83_v39 = vadd.f32 %v82_v33, %v80_v35 }
  0x1f   :  { %v58_v40 = vadd.f32 %v57_v37, %v43_v36  ;;  %v72_v41 = vmul.f32 %v71_v34, %v69_v38 }
  0x20   :  { %v84_v43 = vmax.f32 %v83_v39, 0.0 }
  0x21   :  { %v73_v44 = vadd.f32 %v72_v41, %v58_v40 }
  0x22   :  { %v87_v45 = vmul.f32 %v86_v42, %v84_v43 }
  0x24   :  { %v88_v46 = vadd.f32 %v87_v45, %v73_v44 }
  0x26   :  { %89 = vst [vmem:[#allocation5] sm:$0x1] %v88_v46 }
  0x27   :  { %145 = shalt.err (!%p142_p7)
}
  0x28   :  { %s146_s16 = scalar_lea.hbm %s230_s2, 16 }
  0x29   :  { %p147_p8 = scmp.ne.s32.totalorder %s230_s2, %s146_s16  ;;  %p150_p9 = scmp.lt.u32.totalorder %s146_s16, %s230_s2 }
  0x2b   :  { %p152_p10 = pnand %p150_p9, %p147_p8 }
  0x2d   :  { %155 = shalt.err (!%p152_p10)
}
  0x2e   :  { %99 = dma.vmem_to_hbm [thread:$0]  %s97_s11, 16, %s230_s2, [#allocation3]  }
  0x2f   :  { %158 = dma.done.wait [#allocation3], 16  }
  0x30   :  { %159 = vsyncadd [#allocation3], 4294967280 }
  0x31   :  { %103 = vsyncpa [#allocation3], 1 }
  0x32   :  { %104 = vsyncpa [#allocation4], 1 }

</bundles_post_ra>
